<compile_context>
chip_gen: v5e
topology: v5e:2x2
jax: 0.10.0
libtpu: 0.0.40
codegen_flags: <defaults>
</compile_context>

<pallas_src>
import functools

import jax
import jax.numpy as jnp
from jax import lax
from jax.experimental import pallas as pl
from jax.experimental.pallas import tpu as pltpu

_MIB = 1024 * 1024
_GLOBAL_BLOCK_BUDGET = 8 * _MIB   # VMEM bytes per input block, global mean
_AXIS_BLOCK_BUDGET = 6 * _MIB     # VMEM bytes per input block, axis means


# ----------------------------------------------------------------------------
# Hardware-aware helpers
# ----------------------------------------------------------------------------
@functools.lru_cache(maxsize=None)
def _vmem_limit_bytes():
    """Generation-aware scoped-VMEM limit (64 MiB physical on v7x, 128 MiB else)."""
    try:
        cap = int(pltpu.get_tpu_info().vmem_capacity_bytes)
        return max(32 * _MIB, min(cap * 3 // 4, 96 * _MIB))
    except Exception:
        return 32 * _MIB


@functools.lru_cache(maxsize=None)
def _num_splits():
    """2-way grid split only on parts with 2 TensorCores per chip (v7x)."""
    try:
        kind = jax.devices()[0].device_kind.lower()
    except Exception:
        return 1
    return 2 if "v7" in kind else 1


def _sublane_pack(dtype):
    # native sublane packing: 8 (f32), 16 (bf16/fp16), 32 (int8/fp8)
    return max(8, 32 // max(1, jnp.dtype(dtype).itemsize))


def _round_up(a, b):
    return (a + b - 1) // b * b


def _rows_tile(nrows, row_vmem_bytes, budget, dtype):
    """Row tile for a (rows, lane) block: full extent if it fits the budget
    (always a legal block dim), else the largest sublane-pack multiple."""
    row_vmem_bytes = max(1, row_vmem_bytes)
    if nrows * row_vmem_bytes <= budget:
        return nrows
    pack = _sublane_pack(dtype)
    if nrows <= pack:
        return nrows
    by_budget = max(pack, (budget // row_vmem_bytes) // pack * pack)
    return max(8, min((nrows // pack) * pack, by_budget))


def _global_rows_tile(m, row_vmem_bytes, dtype):
    """Like _rows_tile, but avoids a large non-multiple-of-8 full-extent tile
    (keeps the folded (8, lane) accumulator path available)."""
    budget = _GLOBAL_BLOCK_BUDGET
    if m <= 8:
        return m
    pack = _sublane_pack(dtype)
    if m % 8 == 0 and m * max(1, row_vmem_bytes) <= budget:
        return m
    if m <= pack:
        return (m // 8) * 8
    by_budget = max(pack, (budget // max(1, row_vmem_bytes)) // pack * pack)
    return max(8, min((m // pack) * pack, by_budget))


# ----------------------------------------------------------------------------
# Kernel 1: global mean (dim=None).
# Grid = (splits, steps): splits ("parallel") only >1 on v7x, steps
# ("arbitrary") walks row-tiles of the (M, lane) slab.  Each step folds its
# (tm, lane) block into a small (8, lane) f32 accumulator with VALU adds; the
# expensive full XLU reduce happens once per split on the last step.  Logical
# rows beyond the data (partial tail / over-covered split) are masked to zero.
# ----------------------------------------------------------------------------
def _global_sum_kernel(x_ref, o_ref, acc_ref, *, rows_valid, tm, steps,
                       need_mask, acc_rows):
    c = pl.program_id(0)
    k = pl.program_id(1)

    @pl.when(k == 0)
    def _():
        acc_ref[...] = jnp.zeros_like(acc_ref)

    xb = x_ref[...].astype(jnp.float32)                        # (tm, lane)
    if need_mask:
        row0 = (c * steps + k) * tm
        rows = row0 + lax.broadcasted_iota(jnp.int32, xb.shape, 0)
        xb = jnp.where(rows < rows_valid, xb, 0.0)

    if acc_rows == tm:
        acc_ref[...] += xb
    else:
        # fold the block's rows into the 8-row accumulator (VALU adds only)
        acc_ref[...] += jnp.sum(
            xb.reshape(tm // acc_rows, acc_rows, xb.shape[1]), axis=0)

    @pl.when(k == pl.num_programs(1) - 1)
    def _():
        s = jnp.sum(acc_ref[...], keepdims=True)               # (1, 1)
        o_ref[...] = s[None]                                   # (1, 1, 1)


def _pallas_mean_all(x):
    out_dtype = x.dtype if jnp.issubdtype(x.dtype, jnp.floating) else jnp.float32
    n_total = int(x.size)
    if n_total == 0:
        return jnp.full((), jnp.nan, dtype=out_dtype)

    itemsize = jnp.dtype(x.dtype).itemsize
    extra = None
    x2 = None
    for cand in (512, 256, 128):
        if n_total % cand == 0:
            x2 = x.reshape(n_total // cand, cand)              # free metadata reshape
            break
    if x2 is None:
        # 128-misaligned total: fold a trailing-dim suffix (still a free,
        # contiguous reshape) into the lane axis -> exactly one HBM read,
        # no wrapper-side pad/copy pass.
        lane = 1
        for d in reversed(x.shape):
            if lane > 1 and lane * int(d) > 4096:
                break
            lane *= int(d)
        if lane * itemsize <= _GLOBAL_BLOCK_BUDGET:
            x2 = x.reshape(n_total // lane, lane)
        else:
            # TODO(synk): pathological case (huge, 128-misaligned trailing dim)
            # pays one extra slice pass plus a tiny (<128 elem) remainder sum.
            xf = x.reshape(-1)
            main = (n_total // 128) * 128
            extra = jnp.sum(xf[main:].astype(jnp.float32))
            x2 = xf[:main].reshape(main // 128, 128)

    m, lane = int(x2.shape[0]), int(x2.shape[1])
    row_vmem = _round_up(lane, 128) * itemsize
    tm = _global_rows_tile(m, row_vmem, x2.dtype)
    nblocks = pl.cdiv(m, tm)
    splits = min(_num_splits(), nblocks)
    steps = pl.cdiv(nblocks, splits)
    need_mask = (splits * steps * tm) != m
    acc_rows = 8 if (tm > 8 and tm % 8 == 0) else tm

    if splits == 1:
        in_index = lambda c, k: (k, 0)
    else:
        in_index = lambda c, k: (jnp.minimum(c * steps + k, nblocks - 1), 0)

    partial = pl.pallas_call(
        functools.partial(_global_sum_kernel, rows_valid=m, tm=tm, steps=steps,
                          need_mask=need_mask, acc_rows=acc_rows),
        out_shape=jax.ShapeDtypeStruct((splits, 1, 1), jnp.float32),
        grid_spec=pltpu.PrefetchScalarGridSpec(
            num_scalar_prefetch=0,
            grid=(splits, steps),
            in_specs=[pl.BlockSpec((tm, lane), in_index)],
            out_specs=pl.BlockSpec((1, 1, 1), lambda c, k: (c, 0, 0)),
            scratch_shapes=[pltpu.VMEM((acc_rows, lane), jnp.float32)],
        ),
        compiler_params=pltpu.CompilerParams(
            dimension_semantics=("parallel", "arbitrary"),
            vmem_limit_bytes=_vmem_limit_bytes(),
        ),
        cost_estimate=pl.CostEstimate(
            flops=m * lane, transcendentals=0,
            bytes_accessed=m * lane * itemsize + splits * 4),
    )(x2)

    total = jnp.sum(partial)
    if extra is not None:
        total = total + extra
    return (total * (1.0 / float(n_total))).astype(out_dtype)


# ----------------------------------------------------------------------------
# Kernel 2a: mean over the LAST axis.  Input viewed as (P, R).
#   - small/medium R: one row-tiled grid axis, direct lane reduce per block.
#   - large R: (P tiles, R tiles) grid with R last ("arbitrary") and a (tp, 1)
#     f32 accumulator; partial R tail blocks are lane-masked.
# Partial P tail blocks are safe without masking (each output row depends only
# on its own input row; OOB rows are dropped at writeback).
# ----------------------------------------------------------------------------
def _lane_mean_kernel(x_ref, o_ref, *, inv_r):
    s = jnp.sum(x_ref[...].astype(jnp.float32), axis=1, keepdims=True)
    o_ref[...] = (s * inv_r).astype(o_ref.dtype)


def _lane_mean_acc_kernel(x_ref, o_ref, acc_ref, *, inv_r, r_valid, tr, need_mask):
    k = pl.program_id(1)

    @pl.when(k == 0)
    def _():
        acc_ref[...] = jnp.zeros_like(acc_ref)

    xb = x_ref[...].astype(jnp.float32)                        # (tp, tr)
    if need_mask:
        cols = k * tr + lax.broadcasted_iota(jnp.int32, xb.shape, 1)
        xb = jnp.where(cols < r_valid, xb, 0.0)
    acc_ref[...] += jnp.sum(xb, axis=1, keepdims=True)

    @pl.when(k == pl.num_programs(1) - 1)
    def _():
        o_ref[...] = (acc_ref[...] * inv_r).astype(o_ref.dtype)


def _pallas_mean_last_axis(x2, out_dtype):
    p, r = int(x2.shape[0]), int(x2.shape[1])
    itemsize = jnp.dtype(x2.dtype).itemsize
    out_isize = jnp.dtype(out_dtype).itemsize
    inv_r = 1.0 / float(r)
    cost = pl.CostEstimate(flops=p * r, transcendentals=0,
                           bytes_accessed=p * r * itemsize + p * out_isize)
    row_vmem = _round_up(r, 128) * itemsize

    if 8 * row_vmem <= _AXIS_BLOCK_BUDGET:
        # whole reduction extent fits one block: direct row-wise reduce
        tp = _rows_tile(p, row_vmem, _AXIS_BLOCK_BUDGET, x2.dtype)
        out = pl.pallas_call(
            functools.partial(_lane_mean_kernel, inv_r=inv_r),
            out_shape=jax.ShapeDtypeStruct((p, 1), out_dtype),
            grid_spec=pltpu.PrefetchScalarGridSpec(
                num_scalar_prefetch=0,
                grid=(pl.cdiv(p, tp),),
                in_specs=[pl.BlockSpec((tp, r), lambda i: (i, 0))],
                out_specs=pl.BlockSpec((tp, 1), lambda i: (i, 0)),
            ),
            compiler_params=pltpu.CompilerParams(
                dimension_semantics=("parallel",),
                vmem_limit_bytes=_vmem_limit_bytes(),
            ),
            cost_estimate=cost,
        )(x2)
        return out[:, 0]

    # large R: tile the reduction extent too
    pack = _sublane_pack(x2.dtype)
    tp = p if p <= 8 else (pack if p >= pack else 8)
    tr = max(128, (_AXIS_BLOCK_BUDGET // (tp * itemsize)) // 128 * 128)
    tr = min(tr, pl.cdiv(r, 128) * 128)
    r_tiles = pl.cdiv(r, tr)
    need_mask = (r_tiles * tr) != r

    out = pl.pallas_call(
        functools.partial(_lane_mean_acc_kernel, inv_r=inv_r, r_valid=r,
                          tr=tr, need_mask=need_mask),
        out_shape=jax.ShapeDtypeStruct((p, 1), out_dtype),
        grid_spec=pltpu.PrefetchScalarGridSpec(
            num_scalar_prefetch=0,
            grid=(pl.cdiv(p, tp), r_tiles),
            in_specs=[pl.BlockSpec((tp, tr), lambda i, k: (i, k))],
            out_specs=pl.BlockSpec((tp, 1), lambda i, k: (i, 0)),
            scratch_shapes=[pltpu.VMEM((tp, 1), jnp.float32)],
        ),
        compiler_params=pltpu.CompilerParams(
            dimension_semantics=("parallel", "arbitrary"),
            vmem_limit_bytes=_vmem_limit_bytes(),
        ),
        cost_estimate=cost,
    )(x2)
    return out[:, 0]


# ----------------------------------------------------------------------------
# Kernel 2b: mean over a MIDDLE axis.  Input viewed (for free) as
# (outer, r, inner).
#   - r fits one block (common: small channel axes): direct sublane reduce,
#     grid = (outer, inner_tiles), no scratch.
#   - large r: grid = (outer, inner_tiles, r_tiles) with the reduction axis
#     last ("arbitrary"), element-wise accumulation into a (tr, tin) f32
#     scratch and a single sublane collapse at the end.  Output block
#     (1, 1, tin) is lane-dense.  Partial r tail blocks are row-masked.
# ----------------------------------------------------------------------------
def _mid_axis_mean_direct_kernel(x_ref, o_ref, *, inv_r):
    s = jnp.sum(x_ref[0].astype(jnp.float32), axis=0, keepdims=True)   # (1, tin)
    o_ref[...] = (s[None] * inv_r).astype(o_ref.dtype)                 # (1, 1, tin)


def _mid_axis_mean_kernel(x_ref, o_ref, acc_ref, *, inv_r, r_valid, tr, need_mask):
    k = pl.program_id(2)

    @pl.when(k == 0)
    def _():
        acc_ref[...] = jnp.zeros_like(acc_ref)

    xb = x_ref[0].astype(jnp.float32)                          # (tr, tin)
    if need_mask:
        rows = k * tr + lax.broadcasted_iota(jnp.int32, xb.shape, 0)
        xb = jnp.where(rows < r_valid, xb, 0.0)
    acc_ref[...] += xb

    @pl.when(k == pl.num_programs(2) - 1)
    def _():
        s = jnp.sum(acc_ref[...], axis=0, keepdims=True)       # (1, tin)
        o_ref[...] = (s[None] * inv_r).astype(o_ref.dtype)     # (1, 1, tin)


def _pallas_mean_mid_axis(x3, out_dtype):
    outer, r, inner = (int(s) for s in x3.shape)
    itemsize = jnp.dtype(x3.dtype).itemsize
    out_isize = jnp.dtype(out_dtype).itemsize
    inv_r = 1.0 / float(r)
    # keep the f32 accumulator (== block elems * 4B) at <= 8 MiB
    budget = min(_AXIS_BLOCK_BUDGET, 2 * _MIB * itemsize)
    cost = pl.CostEstimate(flops=outer * r * inner, transcendentals=0,
                           bytes_accessed=outer * r * inner * itemsize
                           + outer * inner * out_isize)

    # lane tile: the largest 128-multiple dividing `inner`, else the full extent.
    tin = inner
    if inner % 128 == 0:
        for cand in (2048, 1024, 512, 256, 128):
            if inner % cand == 0:
                tin = cand
                break
    # TODO(synk): an inner extent that is both huge and 128-misaligned keeps a
    # full-extent lane block; fine for typical means, may exceed VMEM in extremes.

    row_vmem = _round_up(tin, 128) * itemsize
    tr = _rows_tile(r, row_vmem, budget, x3.dtype)
    r_tiles = pl.cdiv(r, tr)
    need_mask = (r_tiles * tr) != r

    if r_tiles == 1:
        out = pl.pallas_call(
            functools.partial(_mid_axis_mean_direct_kernel, inv_r=inv_r),
            out_shape=jax.ShapeDtypeStruct((outer, 1, inner), out_dtype),
            grid_spec=pltpu.PrefetchScalarGridSpec(
                num_scalar_prefetch=0,
                grid=(outer, inner // tin),
                in_specs=[pl.BlockSpec((1, r, tin), lambda o, i: (o, 0, i))],
                out_specs=pl.BlockSpec((1, 1, tin), lambda o, i: (o, 0, i)),
            ),
            compiler_params=pltpu.CompilerParams(
                dimension_semantics=("parallel", "parallel"),
                vmem_limit_bytes=_vmem_limit_bytes(),
            ),
            cost_estimate=cost,
        )(x3)
        return out[:, 0, :]

    out = pl.pallas_call(
        functools.partial(_mid_axis_mean_kernel, inv_r=inv_r, r_valid=r,
                          tr=tr, need_mask=need_mask),
        out_shape=jax.ShapeDtypeStruct((outer, 1, inner), out_dtype),
        grid_spec=pltpu.PrefetchScalarGridSpec(
            num_scalar_prefetch=0,
            grid=(outer, inner // tin, r_tiles),
            in_specs=[pl.BlockSpec((1, tr, tin), lambda o, i, k: (o, k, i))],
            out_specs=pl.BlockSpec((1, 1, tin), lambda o, i, k: (o, 0, i)),
            scratch_shapes=[pltpu.VMEM((tr, tin), jnp.float32)],
        ),
        compiler_params=pltpu.CompilerParams(
            dimension_semantics=("parallel", "parallel", "arbitrary"),
            vmem_limit_bytes=_vmem_limit_bytes(),
        ),
        cost_estimate=cost,
    )(x3)
    return out[:, 0, :]


def _pallas_mean_axis(x, dim):
    dim = dim % x.ndim
    out_dtype = x.dtype if jnp.issubdtype(x.dtype, jnp.floating) else jnp.float32
    shape = tuple(int(s) for s in x.shape)
    out_shape = shape[:dim] + shape[dim + 1:]
    r = shape[dim]
    outer = 1
    for s in shape[:dim]:
        outer *= s
    inner = 1
    for s in shape[dim + 1:]:
        inner *= s

    if outer * inner == 0:
        return jnp.zeros(out_shape, out_dtype)
    if r == 0:
        return jnp.full(out_shape, jnp.nan, dtype=out_dtype)

    if inner == 1:
        out = _pallas_mean_last_axis(x.reshape(outer, r), out_dtype)        # (outer,)
    else:
        out = _pallas_mean_mid_axis(x.reshape(outer, r, inner), out_dtype)  # (outer, inner)
    return out.reshape(out_shape)


# ----------------------------------------------------------------------------
# Module equivalent
# ----------------------------------------------------------------------------
class Average:
    """JAX/Pallas equivalent of torch_utils.Average (no parameters)."""

    def __init__(self, dim=None):
        self.dim = dim

    def __call__(self, x):
        x = jnp.asarray(x)
        if self.dim is None:
            return _pallas_mean_all(x)
        return _pallas_mean_axis(x, self.dim)


if __name__ == "__main__":
    key = jax.random.PRNGKey(0)
    k0, k1, k2 = jax.random.split(key, 3)
    x = jax.random.normal(k0, (2, 4, 16, 16), dtype=jnp.float32)  # NCHW

    # dim=None: global mean -> scalar
    y_all = jax.block_until_ready(Average(dim=None)(x))
    assert y_all.shape == ()
    assert jnp.allclose(y_all, jnp.mean(x), atol=1e-5, rtol=1e-5)

    # axis means: leading, middle, and last axes (keepdim=False)
    for d in (0, 1, 2, -1):
        y = jax.block_until_ready(Average(dim=d)(x))
        ref = jnp.mean(x, axis=d)
        assert y.shape == ref.shape, (d, y.shape, ref.shape)
        assert jnp.allclose(y, ref, atol=1e-5, rtol=1e-5), d

    # global mean: multi-block path with a masked (m % tm != 0) row tail
    x_odd = jax.random.normal(k1, (17, 128), dtype=jnp.float32)
    y_odd = jax.block_until_ready(Average(dim=None)(x_odd))
    assert y_odd.shape == ()
    assert jnp.allclose(y_odd, jnp.mean(x_odd), atol=1e-5, rtol=1e-5)

    # global mean: 128-misaligned total (free trailing-dim view, no pad pass)
    x_mis = jax.random.normal(k2, (17, 130), dtype=jnp.float32)
    y_mis = jax.block_until_ready(Average(dim=None)(x_mis))
    assert jnp.allclose(y_mis, jnp.mean(x_mis), atol=1e-5, rtol=1e-5)

    # bf16 input (f32 accumulation inside the kernel)
    x_bf = jax.random.normal(k2, (16, 256), dtype=jnp.float32).astype(jnp.bfloat16)
    y_bf = jax.block_until_ready(Average(dim=None)(x_bf))
    ref_bf = jnp.mean(x_bf.astype(jnp.float32))
    assert jnp.allclose(y_bf.astype(jnp.float32), ref_bf, atol=1e-2, rtol=1e-2)

    print("KERNEL_OK")
</pallas_src>

<mosaic_0001>
module attributes {stable_mosaic.version = 11 : i64} {
  func.func @_global_sum_kernel(%arg0: i32, %arg1: i32, %arg2: memref<4x512xf32, #tpu.memory_space<vmem>>, %arg3: memref<1x1x1xf32, #tpu.memory_space<vmem>>, %arg4: memref<4x512xf32, #tpu.memory_space<vmem>>) attributes {dimension_semantics = [#tpu.dimension_semantics<parallel>, #tpu.dimension_semantics<arbitrary>], iteration_bounds = array<i64: 1, 1>, scalar_prefetch = 0 : i64, scratch_operands = 1 : i64, tpu.core_type = #tpu.core_type<tc>, window_params = [{transform_indices = @transform_0, window_bounds = array<i64: 4, 512>}, {transform_indices = @transform_1, window_bounds = array<i64: 1, 1, 1>}]} {
    %c0_i32 = arith.constant 0 : i32
    %0 = arith.cmpi eq, %arg1, %c0_i32 : i32
    %1 = arith.extui %0 : i1 to i32
    %c0_i32_0 = arith.constant 0 : i32
    %2 = arith.cmpi ne, %1, %c0_i32_0 : i32
    scf.if %2 {
      %cst = arith.constant 0.000000e+00 : f32
      %10 = vector.broadcast %cst : f32 to vector<4x512xf32>
      %c0_8 = arith.constant 0 : index
      %c0_9 = arith.constant 0 : index
      %11 = vector.load %arg4[%c0_8, %c0_9] : memref<4x512xf32, #tpu.memory_space<vmem>>, vector<4x512xf32>
      tpu.vector_store %arg4[%c0_8, %c0_9], %10 {strides = array<i32>} : memref<4x512xf32, #tpu.memory_space<vmem>>, vector<4x512xf32>,
    } else {
    }
    %c0 = arith.constant 0 : index
    %c0_1 = arith.constant 0 : index
    %3 = vector.load %arg2[%c0, %c0_1] : memref<4x512xf32, #tpu.memory_space<vmem>>, vector<4x512xf32>
    %c0_2 = arith.constant 0 : index
    %c0_3 = arith.constant 0 : index
    %4 = vector.load %arg4[%c0_2, %c0_3] : memref<4x512xf32, #tpu.memory_space<vmem>>, vector<4x512xf32>
    %5 = arith.addf %4, %3 : vector<4x512xf32>
    %c0_4 = arith.constant 0 : index
    %c0_5 = arith.constant 0 : index
    %6 = vector.load %arg4[%c0_4, %c0_5] : memref<4x512xf32, #tpu.memory_space<vmem>>, vector<4x512xf32>
    tpu.vector_store %arg4[%c0_4, %c0_5], %5 {strides = array<i32>} : memref<4x512xf32, #tpu.memory_space<vmem>>, vector<4x512xf32>,
    %c0_i32_6 = arith.constant 0 : i32
    %7 = arith.cmpi eq, %arg1, %c0_i32_6 : i32
    %8 = arith.extui %7 : i1 to i32
    %c0_i32_7 = arith.constant 0 : i32
    %9 = arith.cmpi ne, %8, %c0_i32_7 : i32
    scf.if %9 {
      %c0_8 = arith.constant 0 : index
      %c0_9 = arith.constant 0 : index
      %10 = vector.load %arg4[%c0_8, %c0_9] : memref<4x512xf32, #tpu.memory_space<vmem>>, vector<4x512xf32>
      %11 = vector.shape_cast %10 : vector<4x512xf32> to vector<1x4x512xf32>
      %cst = arith.constant dense<0.000000e+00> : vector<1xf32>
      %12 = vector.multi_reduction <add>, %11, %cst [1, 2] : vector<1x4x512xf32> to vector<1xf32>
      %13 = vector.shape_cast %12 : vector<1xf32> to vector<1x1x1xf32>
      %14 = vector.extract %13[0, 0, 0] : f32 from vector<1x1x1xf32>
      %15 = vector.broadcast %14 : f32 to vector<1x1xf32>
      %16 = vector.shape_cast %15 : vector<1x1xf32> to vector<1x1x1xf32>
      %c0_10 = arith.constant 0 : index
      %c0_11 = arith.constant 0 : index
      %c0_12 = arith.constant 0 : index
      %17 = vector.load %arg3[%c0_10, %c0_11, %c0_12] : memref<1x1x1xf32, #tpu.memory_space<vmem>>, vector<1x1x1xf32>
      tpu.vector_store %arg3[%c0_10, %c0_11, %c0_12], %16 {strides = array<i32>} : memref<1x1x1xf32, #tpu.memory_space<vmem>>, vector<1x1x1xf32>,
    } else {
    }
    return
  }
  func.func @transform_0(%arg0: i32, %arg1: i32) -> (i32, i32) {
    %c0_i32 = arith.constant 0 : i32
    %c0_i32_0 = arith.constant 0 : i32
    return %arg1, %c0_i32 : i32, i32
  }
  func.func @transform_1(%arg0: i32, %arg1: i32) -> (i32, i32, i32) {
    %c0_i32 = arith.constant 0 : i32
    %c0_i32_0 = arith.constant 0 : i32
    %c0_i32_1 = arith.constant 0 : i32
    return %arg0, %c0_i32, %c0_i32_0 : i32, i32, i32
  }
}

</mosaic_0001>

<bundles_post_ra>
// kernel: tpu_custom_call.1
= control target key start
LH: loop header
LB: loop body
LE: loop exit
PB: predicated region body
PF: predicated region fallthrough
CT: control target
= control target key end

     0   :  { %6 = vsyncpa [#allocation4], 0  ;;  %s166_s0 = inlined_call_operand.hbm [shape: f32[4,512], index: 0, kind: input, shape index: {}]   ;;  %s167_s1 = inlined_call_operand.hbm [shape: f32[1,1,1], index: 1, kind: output, shape index: {}]  }
   0x1   :  { %7 = vsyncpa [#allocation5], 0  ;;  %s13_s8 = sshll.u32 %s166_s0, 4  ;;  %s148_s9 = smov [#allocation3]   ;;  %s14_s8 = int_to_ptr.hbm [resolvable:$true] %s13_s8 }
   0x2   :  { %s15_s10 = sshll.u32 %s148_s9, 4  ;;  %s16_s10 = int_to_ptr.vmem [resolvable:$true] %s15_s10 }
   0x3   :  { %18 = dma.hbm_to_vmem [thread:$0]  %s14_s8, 256, %s16_s10, [#allocation4]  }
   0x4   :  { %144 = dma.done.wait [#allocation4], 256  }
   0x5   :  { %145 = vsyncadd [#allocation4], 4294967040  ;;  %v29_v0 = vld [vmem:[#allocation3] sm:$0xff]  ;;  %v30_v1 = vld [vmem:[#allocation3 + $0x8] sm:$0xff]  ;;  %vm55_vm0 = vcmask 1043456   ;;  %s149_s0 = smov [#allocation6]  }
   0x6   :  { %44 = vst [vmem:[#allocation1] ss:$2 sm:$0xff] %v29_v0  ;;  %s80_s11 = sshll.u32 %s149_s0, 4  ;;  %s82_s14 = sshll.u32 %s167_s1, 4  ;;  %vm73_vm1 = vcmask 0   ;;  %s81_s11 = int_to_ptr.vmem [resolvable:$true] %s80_s11  ;;  %s83_s14 = int_to_ptr.hbm [resolvable:$true] %s82_s14 }
   0x7   :  { %46 = vst [vmem:[#allocation1 + $0x10] ss:$2 sm:$0xff] %v30_v1 }
   0xd   :  { %v47_v2 = vld.sshfl [vmem:[#allocation1] sm:$0xff pattern:$0x75316420]  ;;  %v48_v3 = vld.sshfl [vmem:[#allocation1 + $0x8] sm:$0xff pattern:$0x75316420] }
   0xe   :  { %v49_v4 = vld.sshfl [vmem:[#allocation1 + $0x10] sm:$0xff pattern:$0x75316420]  ;;  %v50_v5 = vld.sshfl [vmem:[#allocation1 + $0x18] sm:$0xff pattern:$0x75316420] }
   0xf   :  { %v56_v6 = vsel %vm55_vm0, %v47_v2, 0.0  ;;  %v57_v7 = vsel %vm55_vm0, %v48_v3, 0.0  ;;  %v59_v8 = vsel %vm55_vm0, %v49_v4, 0.0  ;;  %v61_v10 = vsel %vm55_vm0, %v50_v5, 0.0 }
  0x10   :  { %v58_v9 = vadd.f32 %v57_v7, %v56_v6 }
  0x12   :  { %v60_v11 = vadd.f32 %v59_v8, %v58_v9 }
  0x14   :  { %v62_v12 = vadd.f32 %v61_v10, %v60_v11 }
  0x16   :  { %63 = vadd.xlane.f32.xlu0 %v62_v12 }
  0x89   :  { %v64_v13 = vpop.xlane.xlu0 %63 }
  0x8a   :  { %v65_v14 = vrot.slane %v64_v13, 4 }
  0x8c   :  { %v66_v15 = vadd.f32 %v65_v14, %v64_v13 }
  0x8e   :  { %v67_v16 = vrot.slane %v66_v15, 2 }
  0x90   :  { %v68_v17 = vadd.f32 %v67_v16, %v66_v15 }
  0x92   :  { %v69_v18 = vrot.slane %v68_v17, 1 }
  0x94   :  { %v70_v19 = vadd.f32 %v69_v18, %v68_v17 }
  0x96   :  { %92 = vpush %v70_v19 }
  0xc7   :  { %s93_s15 = spop %92 }
  0xc8   :  { %v72_v20 = vstv %s93_s15 }
  0xc9   :  { %74 = vst.msk [vmem:[#allocation6] sm:$0x1] %vm73_vm1, %v72_v20 }
  0xca   :  { %85 = dma.vmem_to_hbm [thread:$0]  %s81_s11, 16, %s83_s14, [#allocation5]  }
  0xcb   :  { %146 = dma.done.wait [#allocation5], 16  }
  0xcc   :  { %147 = vsyncadd [#allocation5], 4294967280 }
  0xcd   :  { %90 = vsyncpa [#allocation4], 1 }
  0xce   :  { %91 = vsyncpa [#allocation5], 1 }

</bundles_post_ra>
